<compile_context>
chip_gen: v7x
topology: tpu7x:2x2x1
jax: 0.10.0
libtpu: 0.0.40
codegen_flags: <defaults>
</compile_context>

<pallas_src>
import jax
import jax.numpy as jnp
from jax.experimental import pallas as pl
from jax.experimental.pallas import tpu as pltpu

_LANES = 128


def _rish_kernel(x_ref, o_ref):
    x = x_ref[...]
    # Compute in f32 (exp precision); cast back on store.  Mem-bound, so the
    # upcast VALU work is hidden under DMA on all generations.
    xf = x.astype(jnp.float32)
    # Stable sigmoid: sigmoid(x) = 1/(1+e^-x) for x>=0, e^x/(1+e^x) for x<0.
    # Both branches share z = exp(-|x|) (argument always <= 0 -> no overflow).
    z = jnp.exp(-jnp.abs(xf))
    # Exact reciprocal for accuracy; kernel stays DMA-bound so the Newton
    # correction is free.  (approx=True would ride the EUP slot if VALU ever
    # became binding, e.g. bf16 I/O on v5e.)
    inv = pl.reciprocal(1.0 + z, approx=False)
    sig = jnp.where(xf >= 0.0, inv, z * inv)
    o_ref[...] = ((xf - 1.0) * sig).astype(o_ref.dtype)


def _round_up(v: int, m: int) -> int:
    return -(-v // m) * m


def rish(x: jnp.ndarray, *, block_bytes: int = 2 * 1024 * 1024) -> jnp.ndarray:
    """Apply Rish elementwise to an arbitrary-shaped array."""
    orig_shape = x.shape
    orig_dtype = x.dtype
    n = x.size
    if n == 0:
        return x

    itemsize = jnp.dtype(orig_dtype).itemsize
    # Native sublane multiple: 8 for 4-byte, 16 for 2-byte, 32 for 1-byte dtypes.
    sub = max(8, 32 // itemsize)

    rows = pl.cdiv(n, _LANES)
    padded_n = rows * _LANES
    x_flat = x.reshape(-1)
    if padded_n != n:
        # Only the sub-128 tail is padded; the n % 128 == 0 fast path copies nothing.
        x_flat = jnp.pad(x_flat, (0, padded_n - n))
    x2d = x_flat.reshape(rows, _LANES)

    # ~block_bytes per block, rounded to a multiple of the sublane tile.
    tm = max(sub, (block_bytes // (_LANES * itemsize)) // sub * sub)
    if rows <= tm:
        # Small input: split into ~2 blocks when possible so v7x megacore can
        # shard the parallel axis across both TensorCores.
        half = _round_up(pl.cdiv(rows, 2), sub)
        tm = min(tm, max(sub, half))
    if tm >= rows:
        tm = rows  # block == full dim (always a legal block shape); grid = 1

    grid = (pl.cdiv(rows, tm),)  # ragged last block is masked by Pallas

    out2d = pl.pallas_call(
        _rish_kernel,
        out_shape=jax.ShapeDtypeStruct((rows, _LANES), orig_dtype),
        grid_spec=pltpu.PrefetchScalarGridSpec(
            num_scalar_prefetch=0,
            grid=grid,
            in_specs=[pl.BlockSpec((tm, _LANES), lambda i: (i, 0))],
            out_specs=pl.BlockSpec((tm, _LANES), lambda i: (i, 0)),
        ),
        compiler_params=pltpu.CompilerParams(
            dimension_semantics=("parallel",),
        ),
    )(x2d)

    out_flat = out2d.reshape(padded_n)
    if padded_n != n:
        out_flat = out_flat[:n]
    return out_flat.reshape(orig_shape)


def rish_reference(x: jnp.ndarray) -> jnp.ndarray:
    """Straight transcription of the PyTorch module (f32 math)."""
    xf = x.astype(jnp.float32)
    ex = jnp.exp(xf)
    return ((xf - 1.0) * ex / (1.0 + ex)).astype(x.dtype)


if __name__ == "__main__":
    key = jax.random.PRNGKey(0)

    # NCHW input, as the PyTorch module would typically receive.
    x = jax.random.normal(key, (2, 4, 16, 16), dtype=jnp.float32)
    y = jax.block_until_ready(rish(x))
    y_ref = rish_reference(x)
    assert y.shape == x.shape and y.dtype == x.dtype
    assert jnp.allclose(y, y_ref, atol=1e-5, rtol=1e-5), "mismatch vs reference"

    # Extreme values: kernel stays finite where the naive formula would give
    # inf/inf = NaN, and matches the (x - 1) * sigmoid(x) asymptote.
    xe = jnp.array([[-200.0, -5.0, 0.0, 5.0, 200.0]], dtype=jnp.float32)
    ye = jax.block_until_ready(rish(xe))
    assert bool(jnp.all(jnp.isfinite(ye))), "non-finite output at extreme inputs"
    assert jnp.allclose(ye[0, -1], 199.0, atol=1e-3), "wrong large-x asymptote"

    # bf16 + non-128-divisible size: exercises the pad path and the
    # dtype-aware (16, 128) sublane rounding.
    xb = jax.random.normal(jax.random.PRNGKey(1), (3, 5, 7), dtype=jnp.bfloat16)
    yb = jax.block_until_ready(rish(xb))
    yb_ref = rish_reference(xb)
    assert yb.shape == xb.shape and yb.dtype == xb.dtype
    assert jnp.allclose(
        yb.astype(jnp.float32), yb_ref.astype(jnp.float32), atol=3e-2, rtol=3e-2
    ), "bf16 mismatch vs reference"

    print("KERNEL_OK")
</pallas_src>

<mosaic_0001>
module attributes {stable_mosaic.version = 11 : i64} {
  func.func @_rish_kernel(%arg0: i32, %arg1: memref<8x128xf32, #tpu.memory_space<vmem>>, %arg2: memref<8x128xf32, #tpu.memory_space<vmem>>) attributes {dimension_semantics = [#tpu.dimension_semantics<parallel>], iteration_bounds = array<i64: 2>, scalar_prefetch = 0 : i64, scratch_operands = 0 : i64, tpu.core_type = #tpu.core_type<tc>, window_params = [{transform_indices = @transform_0, window_bounds = array<i64: 8, 128>}, {transform_indices = @transform_1, window_bounds = array<i64: 8, 128>}]} {
    %c0 = arith.constant 0 : index
    %c0_0 = arith.constant 0 : index
    %0 = vector.load %arg1[%c0, %c0_0] : memref<8x128xf32, #tpu.memory_space<vmem>>, vector<8x128xf32>
    %1 = math.absf %0 : vector<8x128xf32>
    %cst = arith.constant 0.000000e+00 : f32
    %2 = vector.broadcast %cst : f32 to vector<8x128xf32>
    %3 = arith.subf %2, %1 : vector<8x128xf32>
    %4 = math.exp %3 : vector<8x128xf32>
    %cst_1 = arith.constant 1.000000e+00 : f32
    %5 = vector.broadcast %cst_1 : f32 to vector<8x128xf32>
    %6 = arith.addf %5, %4 : vector<8x128xf32>
    %7 = tpu.reciprocal %6 : vector<8x128xf32> -> vector<8x128xf32>
    %cst_2 = arith.constant 0.000000e+00 : f32
    %8 = vector.broadcast %cst_2 : f32 to vector<8x128xf32>
    %9 = arith.cmpf oge, %0, %8 : vector<8x128xf32>
    %10 = arith.mulf %4, %7 : vector<8x128xf32>
    %11 = arith.select %9, %7, %10 : vector<8x128xi1>, vector<8x128xf32>
    %cst_3 = arith.constant 1.000000e+00 : f32
    %12 = vector.broadcast %cst_3 : f32 to vector<8x128xf32>
    %13 = arith.subf %0, %12 : vector<8x128xf32>
    %14 = arith.mulf %13, %11 : vector<8x128xf32>
    %c0_4 = arith.constant 0 : index
    %c0_5 = arith.constant 0 : index
    %15 = vector.load %arg2[%c0_4, %c0_5] : memref<8x128xf32, #tpu.memory_space<vmem>>, vector<8x128xf32>
    tpu.vector_store %arg2[%c0_4, %c0_5], %14 {strides = array<i32>} : memref<8x128xf32, #tpu.memory_space<vmem>>, vector<8x128xf32>,
    return
  }
  func.func @transform_0(%arg0: i32) -> (i32, i32) {
    %c0_i32 = arith.constant 0 : i32
    %c0_i32_0 = arith.constant 0 : i32
    return %arg0, %c0_i32 : i32, i32
  }
  func.func @transform_1(%arg0: i32) -> (i32, i32) {
    %c0_i32 = arith.constant 0 : i32
    %c0_i32_0 = arith.constant 0 : i32
    return %arg0, %c0_i32 : i32, i32
  }
}

</mosaic_0001>

<bundles_post_ra>
// kernel: tpu_custom_call.1
= control target key start
LH: loop header
LB: loop body
LE: loop exit
PB: predicated region body
PF: predicated region fallthrough
CT: control target
= control target key end

     0   :  { %6 = vsyncpa [#allocation3], 0  ;;  %s563_s0 = inlined_call_operand.hbm [shape: f32[16,128], index: 0, kind: input, shape index: {}]   ;;  %s564_s1 = inlined_call_operand.hbm [shape: f32[16,128], index: 1, kind: output, shape index: {}]  }
   0x1   :  { %8 = vsyncpa [#allocation3 + $0x1], 0 }
   0x2   :  { %9 = vsyncpa [#allocation4], 0 }
   0x3   :  { %11 = vsyncpa [#allocation4 + $0x1], 0  ;;  %s402_s6 = smov 0   ;;  %s404_s7 = smov 0  }
   0x4   :  { %s406_s8 = smov 0   ;;  %s408_s9 = smov 0  }
   0x5 LB: > { %s423_s10 = sadd.s32 4294967295, %s388_s9   ;;  %s229_s11 = sadd.s32 4294967294, %s388_s9   ;;  %s388_s9 = sphi %s408_s9, %s579_s9   ;;  %s384_s8 = sphi %s406_s8, %s578_s8   ;;  %s380_s7 = sphi %s404_s7, %s577_s7   ;;  %s376_s6 = sphi %s402_s6, %s576_s6  }
   0x6   : > { %s427_s12 = sadd.s32 1, %s388_s9   ;;  %s24_s13 = sadd.s32 1, %s384_s8 }
   0x7   : > { %s21_s14 = ssub.s32 %s388_s9, %s427_s12  ;;  %p31_p0 = scmp.ne.s32.totalorder %s384_s8, %s380_s7 }
   0x8   : > { %p22_p1 = scmp.eq.s32.totalorder %s21_s14, 0  ;;  %p32_p2 = scmp.eq.s32.totalorder %s388_s9, 0 }
   0x9   : > { %p37_p3 = scmp.ne.s32.totalorder %s380_s7, %s376_s6  ;;  %p38_p4 = scmp.eq.s32.totalorder %s423_s10, 0 }
   0xa   : > { %s439_s15 = scalar_select %p22_p1, %s384_s8, %s24_s13  }
   0xb   : > { %p441_p5 = por %p32_p2, %p31_p0  ;;  %p445_p6 = por %p38_p4, %p37_p3 }
   0xc   : > { %p61_p7 = scmp.eq.s32.totalorder %s423_s10, 1  ;;  %p67_p8 = scmp.eq.s32.totalorder %s229_s11, 1 }
   0xd   : > { %p254_p10 = scmp.lt.s32.totalorder %s388_s9, 2  ;;  %s87_s20 = sand.u32 1, %s384_s8  }
   0xe   : > { %p452_p11 = por %p61_p7, %p31_p0  ;;  %p456_p12 = por %p67_p8, %p37_p3 }
   0xf   : > { %s233_s21 = sshll.u32 %s388_s9, 7  ;;  %s232_s22 = sshll.u32 %s87_s20, 3 }
  0x10   : > { %s568_s18 = scalar_select %p452_p11, 1, 0 }
  0x11   : > { %s569_s19 = scalar_select %p456_p12, 1, 0 }
  0x12   : > { %s465_s25 = scalar_lea.hbm %s563_s0, %s233_s21  ;;  %s91_s26 = scalar_lea.vmem [#allocation2], %s232_s22 }
  0x13   : > { %s98_s27 = sshll.u32 %s91_s26, 4  ;;  %p469_p13 = pnand %p254_p10, %p441_p5  ;;  %s473_s27 = int_to_ptr.vmem [resolvable:$true] %s98_s27 }
  0x14   : > { %s88_s29 = scalar_lea.sflag [#allocation3], %s87_s20  ;;  %s292_s30 = scalar_lea.hbm %s465_s25, 128 }
  0x15   : > { %p293_p2 = scmp.ne.s32.totalorder %s465_s25, %s292_s30  ;;  %p294_p3 = pneg %p469_p13 }
  0x16   : > { %s297_s4 = scalar_lea.hbm %s563_s0, 256  ;;  %p298_p5 = scmp.lt.u32.totalorder %s465_s25, %s563_s0 }
  0x17   : > { %p295_p4 = pnand %p294_p3, %p293_p2  ;;  %p299_p8 = scmp.lt.u32.totalorder %s297_s4, %s292_s30 }
  0x18   : > { %p301_p9 = scmp.lt.u32.totalorder %s292_s30, %s465_s25 }
  0x19   : > { %p296_p7 = pneg %p295_p4  ;;  %p300_p10 = por %p299_p8, %p298_p5 }
  0x1b   : > { %p302_p0 = por %p301_p9, %p300_p10 }
  0x1d   : > { %p303_p1 = pnand %p302_p0, %p296_p7 }
  0x1f   : > { %306 = shalt.err (!%p303_p1)
}
  0x20   : > { %s307_s13 = scalar_lea.vmem %s473_s27, 128  ;;  %s390_s14 = smov [#allocation2]  }
  0x21   : > { %p308_p2 = scmp.ne.s32.totalorder %s473_s27, %s307_s13  ;;  %s312_s16 = sshll.u32 %s390_s14, 4  ;;  %s313_s16 = int_to_ptr.vmem [resolvable:$false] %s312_s16 }
  0x22   : > { %s314_s20 = scalar_lea.vmem %s313_s16, 256  ;;  %p315_p11 = scmp.lt.s32.totalorder %s473_s27, %s313_s16 }
  0x23   : > { %p310_p4 = pnand %p308_p2, %p294_p3  ;;  %p316_p5 = scmp.lt.s32.totalorder %s314_s20, %s307_s13 }
  0x25   : > { %p311_p12 = pneg %p310_p4  ;;  %p317_p8 = por %p316_p5, %p315_p11 }
  0x27   : > { %p318_p9 = pnand %p317_p8, %p311_p12 }
  0x29   : > { %321 = shalt.err (!%p318_p9)
}
  0x2a   : > { %249 = dma.hbm_to_vmem [thread:$0]  (!%p469_p13), %s465_s25, 128, %s473_s27, %s88_s29  }
  0x2b   : > { %p571_p0 = scmp.lt.s32.totalorder %s388_s9, 3  ;;  %p572_p1 = scmp.ge.s32.totalorder %s388_s9, 1 }
  0x2d   : > { %p104_p3 = pnand %p572_p1, %p571_p0 }
  0x2e   : > { %s507_s21 = sand.u32 (!%p104_p3), 1, %s380_s7  }
  0x2f   : > { %107 = sbr.rel (%p104_p3) target bundleno = 105 (0x69), region = 24  ;;  %s235_s22 = sshll.u32 (!%p104_p3), %s507_s21, 3 }
  0x30   : > { %s110_s23 = scalar_lea.sflag (!%p104_p3), [#allocation3], %s507_s21  ;;  %s113_s24 = scalar_lea.vmem (!%p104_p3), [#allocation2], %s235_s22 }
  0x36   : > { %367 = dma.done.wait (%p445_p6), %s110_s23, 128  }
  0x37   : > { %369 = vsyncadd (%p445_p6), %s110_s23, 4294967168  ;;  %v132_v0 = vld [vmem:[%s113_s24] sm:$0xff]  ;;  %s131_s25 = scalar_lea.vmem [#allocation5], %s235_s22  ;;  %s239_s27 = sshll.u32 %s423_s10, 7 }
  0x38   : > { %v133_v1 = vand.u32 2147483647, %v132_v0  ;;  %vm139_vm0 = vcmp.ge.f32.partialorder %v132_v0, 0.0  ;;  %v237_v7 = vadd.f32 -1.0, %v132_v0  ;;  %s159_s26 = sshll.u32 %s131_s25, 4  ;;  %s521_s29 = scalar_lea.hbm %s564_s1, %s239_s27  ;;  %s516_s26 = int_to_ptr.vmem [resolvable:$true] %s159_s26 }
  0x39   : > { %s146_s30 = scalar_lea.sflag [#allocation4], %s507_s21  ;;  %s322_s2 = scalar_lea.vmem %s516_s26, 128 }
  0x3a   : > { %v134_v2 = vsub.f32 0.0, %v133_v1  ;;  %p323_p6 = scmp.ne.s32.totalorder %s516_s26, %s322_s2  ;;  %p573_p11 = scmp.ne.s32.totalorder %s568_s18, 0 }
  0x3b   : > { %s391_s10 = smov [#allocation5]  }
  0x3c   : > { %v135_v3 = vmul.f32 1.442695, %v134_v2  ;;  %p324_p12 = pnand %p323_p6, %p573_p11  ;;  %s326_s3 = sshll.u32 %s391_s10, 4  ;;  %s327_s3 = int_to_ptr.vmem [resolvable:$false] %s326_s3 }
  0x3d   : > { %s328_s4 = scalar_lea.vmem %s327_s3, 256  ;;  %p329_p7 = scmp.lt.s32.totalorder %s516_s26, %s327_s3 }
  0x3e   : > { %288 = vpow2.f32 %v135_v3  ;;  %p325_p13 = pneg %p324_p12  ;;  %p330_p10 = scmp.lt.s32.totalorder %s328_s4, %s322_s2 }
  0x40   : > { %p331_p2 = por %p330_p10, %p329_p7 }
  0x42   : > { %p332_p4 = pnand %p331_p2, %p325_p13 }
  0x48   : > { %v289_v4 = vpop.eup %288 }
  0x49   : > { %v137_v5 = vadd.f32 1.0, %v289_v4 }
  0x4b   : > { %290 = vrcp.f32 %v137_v5 }
  0x55   : > { %v291_v6 = vpop.eup %290 }
  0x56   : > { %v140_v8 = vmul.f32 %v291_v6, %v289_v4 }
  0x58   : > { %v141_v9 = vsel %vm139_vm0, %v291_v6, %v140_v8 }
  0x59   : > { %v143_v10 = vmul.f32 %v237_v7, %v141_v9 }
  0x5b   : > { %144 = vst [vmem:[%s131_s25] sm:$0xff] %v143_v10 }
  0x5c   : > { %335 = shalt.err (!%p332_p4)
}
  0x5d   : > { %s336_s5 = scalar_lea.hbm %s521_s29, 128  ;;  %s340_s14 = scalar_lea.hbm %s564_s1, 256 }
  0x5e   : > { %p337_p5 = scmp.ne.s32.totalorder %s521_s29, %s336_s5  ;;  %p341_p0 = scmp.lt.u32.totalorder %s521_s29, %s564_s1 }
  0x5f   : > { %p342_p1 = scmp.lt.u32.totalorder %s340_s14, %s336_s5  ;;  %p344_p6 = scmp.lt.u32.totalorder %s336_s5, %s521_s29 }
  0x60   : > { %p338_p8 = pnand %p337_p5, %p573_p11 }
  0x61   : > { %p343_p3 = por %p342_p1, %p341_p0 }
  0x62   : > { %p339_p9 = pneg %p338_p8 }
  0x63   : > { %p345_p12 = por %p344_p6, %p343_p3 }
  0x65   : > { %p346_p13 = pnand %p345_p12, %p339_p9 }
  0x67   : > { %349 = shalt.err (!%p346_p13)
}
  0x68   : > { %244 = dma.vmem_to_hbm [thread:$0]  (%p573_p11), %s516_s26, 128, %s521_s29, %s146_s30  }
  0x69 PF: > { %s171_s21 = sand.u32 1, %s376_s6   ;;  %p574_p7 = scmp.ne.s32.totalorder %s569_s19, 0 }
  0x6a   : > { %p575_p10 = scmp.ge.s32.totalorder %s388_s9, 2  ;;  %s172_s22 = scalar_lea.sflag [#allocation4], %s171_s21 }
  0x6c   : > { %p251_p2 = pnand %p575_p10, %p574_p7 }
  0x6e   : > { %371 = dma.done.wait (!%p251_p2), %s172_s22, 128  }
  0x6f   : > { %373 = vsyncadd (!%p251_p2), %s172_s22, 4294967168  ;;  %p14_p4 = scmp.ge.s32.totalorder %s427_s12, 4   ;;  %s576_s6 = smov %s380_s7 }
  0x70   : > { %s577_s7 = smov %s384_s8  ;;  %s578_s8 = smov %s439_s15 }
  0x71   : > { %s579_s9 = smov %s427_s12  ;;  %16 = sbr.rel (!%p14_p4) target bundleno = 5 (0x5), region = 69 }
  0x78   :  { %177 = vsyncpa [#allocation3], 1 }
  0x79   :  { %179 = vsyncpa [#allocation3 + $0x1], 1 }
  0x7a   :  { %180 = vsyncpa [#allocation4], 1 }
  0x7b   :  { %182 = vsyncpa [#allocation4 + $0x1], 1 }

</bundles_post_ra>
